<compile_context>
chip_gen: v5e
topology: v5e:2x2
jax: 0.10.0
libtpu: 0.0.40
codegen_flags: <defaults>
</compile_context>

<pallas_src>
import jax
import jax.numpy as jnp
from jax import lax
from jax.experimental import pallas as pl
from jax.experimental.pallas import tpu as pltpu


def _round_up(x, m):
    return ((x + m - 1) // m) * m


def _tpu_vmem_capacity_bytes():
    try:
        return int(pltpu.get_tpu_info().vmem_capacity_bytes)
    except Exception:
        return 128 * 1024 * 1024  # v5e/v6e default


# ----------------------------- kernels -------------------------------------


def _linear_kernel_single(x_ref, w_ref, o_ref):
    # Whole K reduction fits in one tile: store result directly, no scratch.
    o_ref[...] = lax.dot_general(
        x_ref[...], w_ref[...],
        dimension_numbers=(((1,), (0,)), ((), ())),   # x[K] . W[K,:]
        preferred_element_type=jnp.float32,
    ).astype(o_ref.dtype)


def _linear_kernel_multi_f32out(x_ref, w_ref, o_ref):
    # f32 output: the output tile's block index ignores k, so it stays
    # resident in VMEM across the K axis -> accumulate into it directly.
    @pl.when(pl.program_id(2) == 0)
    def _init():
        o_ref[...] = jnp.zeros_like(o_ref)

    o_ref[...] += lax.dot_general(
        x_ref[...], w_ref[...],
        dimension_numbers=(((1,), (0,)), ((), ())),
        preferred_element_type=jnp.float32,
    )


def _linear_kernel_multi_acc(x_ref, w_ref, o_ref, acc_ref):
    # Narrow output dtype: keep an f32 VMEM accumulator, cast on the last step.
    @pl.when(pl.program_id(2) == 0)
    def _init():
        acc_ref[...] = jnp.zeros_like(acc_ref)

    acc_ref[...] += lax.dot_general(
        x_ref[...], w_ref[...],
        dimension_numbers=(((1,), (0,)), ((), ())),
        preferred_element_type=jnp.float32,
    )

    @pl.when(pl.program_id(2) == pl.num_programs(2) - 1)
    def _finalize():
        o_ref[...] = acc_ref[...].astype(o_ref.dtype)


# ----------------------------- wrapper --------------------------------------


class PallasLinear:
    """y = x @ weight.T (nn.Linear, bias=False).

    `weight` is given in PyTorch [out_features, in_features] layout; it is
    transposed to [K, N] and padded to tile multiples ONCE here (amortized
    over all calls), so the per-call path touches the weight in HBM exactly
    once per tile and feeds the MXU with K-on-sublanes tiles.
    """

    def __init__(self, weight, *, tm_cap=512, tn=None, tk=None):
        weight = jnp.asarray(weight)
        N, K = weight.shape
        self.N, self.K = N, K
        self.itemsize = jnp.dtype(weight.dtype).itemsize
        # Minimum sublane tile: f32 -> 8, bf16 -> 16, int8/fp8 -> 32.
        self.min_sub = {4: 8, 2: 16, 1: 32}.get(self.itemsize, 8)

        vmem_cap = _tpu_vmem_capacity_bytes()
        # Scoped-VMEM request: 75% of physical (48 MiB on v7x, 96 MiB v5e/v6e).
        self.vmem_limit = min(int(vmem_cap * 3 // 4), 96 * 1024 * 1024)
        # Tile working-set budget: conservative on v7x (64 MiB VMEM), larger
        # on v5e/v6e (128 MiB VMEM).
        tile_budget = (24 if vmem_cap <= 64 * 1024 * 1024 else 48) * 1024 * 1024

        # Validate / clamp tile sizes to legal multiples.
        self.tm_cap = _round_up(max(int(tm_cap), self.min_sub), self.min_sub)
        if tn is None:
            tn = min(_round_up(N, 128), 512)
        else:
            tn = _round_up(max(int(tn), 128), 128)
        if tk is None:
            tk = min(_round_up(K, 128), 2048)
        else:
            tk = _round_up(max(int(tk), 128), 128)

        # Keep double-buffered inputs + f32 accumulator + output tiles under
        # the per-generation budget (computed against the tm cap).
        def _vmem_bytes(tk_):
            return (2 * (self.tm_cap * tk_ + tn * tk_) * self.itemsize
                    + self.tm_cap * tn * (4 + 2 * self.itemsize))

        while tk > 128 and _vmem_bytes(tk) > tile_budget:
            tk = _round_up(tk // 2, 128)

        self.tn, self.tk = tn, tk
        self.Np, self.Kp = _round_up(N, tn), _round_up(K, tk)

        # One-time transpose + pad (zero padding is exact for matmul).
        w_t = weight.T                                   # [K, N]
        if (self.Kp, self.Np) != (K, N):
            w_t = jnp.pad(w_t, ((0, self.Kp - K), (0, self.Np - N)))
        self.w_t = jax.block_until_ready(w_t)

    def __call__(self, x):
        M, K = x.shape
        assert K == self.K, "in_features mismatch"

        tm = min(_round_up(M, self.min_sub), self.tm_cap)
        Mp = _round_up(M, tm)
        Kp = self.Kp
        if (Mp, Kp) != (M, K):
            x = jnp.pad(x, ((0, Mp - M), (0, Kp - K)))

        tn, tk = self.tn, self.tk
        grid = (Mp // tm, self.Np // tn, Kp // tk)
        out_dtype = x.dtype

        if grid[2] == 1:
            kernel, scratch = _linear_kernel_single, []
        elif out_dtype == jnp.float32:
            kernel, scratch = _linear_kernel_multi_f32out, []
        else:
            kernel = _linear_kernel_multi_acc
            scratch = [pltpu.VMEM((tm, tn), jnp.float32)]

        cost = pl.CostEstimate(
            flops=2 * M * self.N * K,
            transcendentals=0,
            bytes_accessed=(M * K + self.N * K + M * self.N) * self.itemsize,
        )

        out = pl.pallas_call(
            kernel,
            out_shape=jax.ShapeDtypeStruct((Mp, self.Np), out_dtype),
            grid_spec=pltpu.PrefetchScalarGridSpec(
                num_scalar_prefetch=0,
                grid=grid,
                in_specs=[
                    pl.BlockSpec((tm, tk), lambda i, j, k: (i, k)),   # x tile
                    pl.BlockSpec((tk, tn), lambda i, j, k: (k, j)),   # W^T tile
                ],
                out_specs=pl.BlockSpec((tm, tn), lambda i, j, k: (i, j)),
                scratch_shapes=scratch,
            ),
            compiler_params=pltpu.CompilerParams(
                dimension_semantics=("parallel", "parallel", "arbitrary"),
                vmem_limit_bytes=self.vmem_limit,
            ),
            cost_estimate=cost,
        )(x, self.w_t)

        if (Mp, self.Np) != (M, self.N):
            out = out[:M, :self.N]
        return out


def linear_pallas(x, weight, **kw):
    """Functional convenience wrapper (builds the prepared weight each call).
    Prefer constructing PallasLinear once and reusing it."""
    return PallasLinear(weight, **kw)(x)


if __name__ == "__main__":
    key = jax.random.PRNGKey(0)
    kx, kw, kx2, kw2, kx3, kw3 = jax.random.split(key, 6)

    # 1) Shipped shape: batch=8, in_features=128, out_features=128 (f32).
    batch, in_features, out_features = 8, 128, 128
    x = jax.random.normal(kx, (batch, in_features), dtype=jnp.float32)
    bound = 1.0 / (in_features ** 0.5)
    weight = jax.random.uniform(
        kw, (out_features, in_features), dtype=jnp.float32,
        minval=-bound, maxval=bound)

    layer = PallasLinear(weight)               # one-time weight transpose/pad
    y = jax.block_until_ready(layer(x))
    y_ref = x @ weight.T
    assert y.shape == (batch, out_features)
    assert jnp.allclose(y, y_ref, atol=1e-5, rtol=1e-5)

    # 2) Non-divisible shape (exercises per-call x padding; weight padded once).
    M2, K2, N2 = 5, 200, 96
    x2 = jax.random.normal(kx2, (M2, K2), dtype=jnp.float32)
    w2 = jax.random.uniform(kw2, (N2, K2), dtype=jnp.float32,
                            minval=-1.0 / K2 ** 0.5, maxval=1.0 / K2 ** 0.5)
    y2 = jax.block_until_ready(PallasLinear(w2)(x2))
    assert y2.shape == (M2, N2)
    assert jnp.allclose(y2, x2 @ w2.T, atol=1e-5, rtol=1e-5)

    # 3) Multi-K path, f32 output (accumulates directly into o_ref).
    M3, K3, N3 = 16, 384, 256
    x3 = jax.random.normal(kx3, (M3, K3), dtype=jnp.float32)
    w3 = jax.random.uniform(kw3, (N3, K3), dtype=jnp.float32,
                            minval=-1.0 / K3 ** 0.5, maxval=1.0 / K3 ** 0.5)
    y3 = jax.block_until_ready(PallasLinear(w3, tk=128)(x3))   # grid k = 3
    assert jnp.allclose(y3, x3 @ w3.T, atol=1e-5, rtol=1e-5)

    # 4) Multi-K path, bf16 output (f32 VMEM accumulator + final cast).
    x4 = x3.astype(jnp.bfloat16)
    w4 = w3.astype(jnp.bfloat16)
    y4 = jax.block_until_ready(PallasLinear(w4, tk=128)(x4))
    y4_ref = x4.astype(jnp.float32) @ w4.astype(jnp.float32).T
    assert jnp.allclose(y4.astype(jnp.float32), y4_ref, atol=5e-2, rtol=5e-2)

    print("KERNEL_OK")
</pallas_src>

<mosaic_0001>
module attributes {stable_mosaic.version = 11 : i64} {
  func.func @_linear_kernel_single(%arg0: i32, %arg1: i32, %arg2: i32, %arg3: memref<8x128xf32, #tpu.memory_space<vmem>>, %arg4: memref<128x128xf32, #tpu.memory_space<vmem>>, %arg5: memref<8x128xf32, #tpu.memory_space<vmem>>) attributes {dimension_semantics = [#tpu.dimension_semantics<parallel>, #tpu.dimension_semantics<parallel>, #tpu.dimension_semantics<arbitrary>], iteration_bounds = array<i64: 1, 1, 1>, scalar_prefetch = 0 : i64, scratch_operands = 0 : i64, tpu.core_type = #tpu.core_type<tc>, window_params = [{transform_indices = @transform_0, window_bounds = array<i64: 8, 128>}, {transform_indices = @transform_1, window_bounds = array<i64: 128, 128>}, {transform_indices = @transform_2, window_bounds = array<i64: 8, 128>}]} {
    %c0 = arith.constant 0 : index
    %c0_0 = arith.constant 0 : index
    %0 = vector.load %arg3[%c0, %c0_0] : memref<8x128xf32, #tpu.memory_space<vmem>>, vector<8x128xf32>
    %c0_1 = arith.constant 0 : index
    %c0_2 = arith.constant 0 : index
    %1 = vector.load %arg4[%c0_1, %c0_2] : memref<128x128xf32, #tpu.memory_space<vmem>>, vector<128x128xf32>
    %cst = arith.constant dense<0.000000e+00> : vector<8x128xf32>
    %2 = tpu.matmul %0, %1, %cst {dimension_numbers = #tpu.dot_dimension_numbers<[1], [0], [0], [1], [0, 0, 1, 1], [], []>} : vector<8x128xf32>, vector<128x128xf32>, vector<8x128xf32> -> vector<8x128xf32>
    %c0_3 = arith.constant 0 : index
    %c0_4 = arith.constant 0 : index
    %3 = vector.load %arg5[%c0_3, %c0_4] : memref<8x128xf32, #tpu.memory_space<vmem>>, vector<8x128xf32>
    tpu.vector_store %arg5[%c0_3, %c0_4], %2 {strides = array<i32>} : memref<8x128xf32, #tpu.memory_space<vmem>>, vector<8x128xf32>,
    return
  }
  func.func @transform_0(%arg0: i32, %arg1: i32, %arg2: i32) -> (i32, i32) {
    %c0_i32 = arith.constant 0 : i32
    return %arg0, %arg2 : i32, i32
  }
  func.func @transform_1(%arg0: i32, %arg1: i32, %arg2: i32) -> (i32, i32) {
    %c0_i32 = arith.constant 0 : i32
    return %arg2, %arg1 : i32, i32
  }
  func.func @transform_2(%arg0: i32, %arg1: i32, %arg2: i32) -> (i32, i32) {
    %c0_i32 = arith.constant 0 : i32
    return %arg0, %arg1 : i32, i32
  }
}

</mosaic_0001>

<bundles_post_ra>
// kernel: tpu_custom_call.1
= control target key start
LH: loop header
LB: loop body
LE: loop exit
PB: predicated region body
PF: predicated region fallthrough
CT: control target
= control target key end

     0   :  { %7 = vsyncpa [#allocation3], 0  ;;  %s210_s0 = inlined_call_operand.hbm [shape: f32[8,128], index: 0, kind: input, shape index: {}]   ;;  %s211_s1 = inlined_call_operand.hbm [shape: f32[128,128], index: 1, kind: input, shape index: {}]   ;;  %s212_s2 = inlined_call_operand.hbm [shape: f32[8,128], index: 2, kind: output, shape index: {}]  }
   0x1   :  { %8 = vsyncpa [#allocation6], 0 }
   0x2   :  { %9 = vsyncpa [#allocation4], 0  ;;  %s15_s11 = sshll.u32 %s210_s0, 4  ;;  %s181_s12 = smov [#allocation2]   ;;  %s16_s11 = int_to_ptr.hbm [resolvable:$true] %s15_s11 }
   0x3   :  { %s17_s13 = sshll.u32 %s181_s12, 4  ;;  %s25_s16 = sshll.u32 %s211_s1, 4  ;;  %s18_s13 = int_to_ptr.vmem [resolvable:$true] %s17_s13  ;;  %s26_s16 = int_to_ptr.hbm [resolvable:$true] %s25_s16 }
   0x4   :  { %20 = dma.hbm_to_vmem [thread:$0]  %s16_s11, 128, %s18_s13, [#allocation3]  }
   0x5   :  { %s182_s17 = smov [#allocation5]   ;;  %s183_s19 = smov 128  }
   0x6   :  { %s27_s18 = sshll.u32 %s182_s17, 4  ;;  %s184_s20 = smov 8   ;;  %s28_s18 = int_to_ptr.vmem [resolvable:$true] %s27_s18 }
   0x7   :  { %33 = dma.hbm_to_vmem [thread:$0]  %s26_s16, 2048, %s28_s18, [#allocation6], %s183_s19, %s183_s19, %s184_s20  }
   0x8   :  { %175 = dma.done.wait [#allocation3], 128  }
   0x9   :  { %176 = vsyncadd [#allocation3], 4294967168 }
   0xa   :  { %177 = dma.done.wait [#allocation6], 2048  }
   0xb   :  { %178 = vsyncadd [#allocation6], 4294965248  ;;  %v58_v0 = vld [vmem:[#allocation5 + $0x78] sm:$0xff]  ;;  %v57_v1 = vld [vmem:[#allocation5 + $0x70] sm:$0xff]  ;;  %s185_s0 = smov [#allocation7]   ;;  %s87_s23 = sshll.u32 %s212_s2, 4  ;;  %s88_s23 = int_to_ptr.hbm [resolvable:$true] %s87_s23 }
   0xc   :  { %59 = vmatpush.msra.mxu0 %v58_v0  ;;  %v56_v2 = vld [vmem:[#allocation5 + $0x68] sm:$0xff]  ;;  %v55_v3 = vld [vmem:[#allocation5 + $0x60] sm:$0xff]  ;;  %v54_v4 = vld [vmem:[#allocation5 + $0x58] sm:$0xff]  ;;  %s85_s1 = sshll.u32 %s185_s0, 4  ;;  %s86_s1 = int_to_ptr.vmem [resolvable:$true] %s85_s1 }
   0xd   :  { %v53_v5 = vld [vmem:[#allocation5 + $0x50] sm:$0xff]  ;;  %v52_v6 = vld [vmem:[#allocation5 + $0x48] sm:$0xff]  ;;  %v51_v7 = vld [vmem:[#allocation5 + $0x40] sm:$0xff] }
   0xe   :  { %60 = vmatpush.msra.mxu0 %v57_v1  ;;  %v50_v8 = vld [vmem:[#allocation5 + $0x38] sm:$0xff]  ;;  %v49_v9 = vld [vmem:[#allocation5 + $0x30] sm:$0xff]  ;;  %v48_v10 = vld [vmem:[#allocation5 + $0x28] sm:$0xff] }
   0xf   :  { %v47_v11 = vld [vmem:[#allocation5 + $0x20] sm:$0xff]  ;;  %v46_v12 = vld [vmem:[#allocation5 + $0x18] sm:$0xff]  ;;  %v45_v13 = vld [vmem:[#allocation5 + $0x10] sm:$0xff] }
  0x10   :  { %61 = vmatpush.msra.mxu0 %v56_v2  ;;  %v44_v14 = vld [vmem:[#allocation5 + $0x8] sm:$0xff]  ;;  %v43_v15 = vld [vmem:[#allocation5] sm:$0xff]  ;;  %v42_v16 = vld [vmem:[#allocation2] sm:$0xff] }
  0x12   :  { %62 = vmatpush.msra.mxu0 %v55_v3 }
  0x14   :  { %63 = vmatpush.msra.mxu0 %v54_v4 }
  0x16   :  { %64 = vmatpush.msra.mxu0 %v53_v5 }
  0x18   :  { %65 = vmatpush.msra.mxu0 %v52_v6 }
  0x1a   :  { %66 = vmatpush.msra.mxu0 %v51_v7 }
  0x1c   :  { %67 = vmatpush.msra.mxu0 %v50_v8 }
  0x1e   :  { %68 = vmatpush.msra.mxu0 %v49_v9 }
  0x20   :  { %69 = vmatpush.msra.mxu0 %v48_v10 }
  0x22   :  { %70 = vmatpush.msra.mxu0 %v47_v11 }
  0x24   :  { %71 = vmatpush.msra.mxu0 %v46_v12 }
  0x26   :  { %72 = vmatpush.msra.mxu0 %v45_v13 }
  0x28   :  { %73 = vmatpush.msra.mxu0 %v44_v14 }
  0x2a   :  { %74 = vmatpush.msra.mxu0 %v43_v15 }
  0x2b   :  { %75 = vmatmul.f32.vlgmr.msra.gmra.mxu0 %v42_v16 }
  0xa8   :  { %v76_v17 = vpop.f32.mrf.mxu0 }
  0xa9   :  { %79 = vst [vmem:[#allocation7] sm:$0xff] %v76_v17 }
  0xaa   :  { %90 = dma.vmem_to_hbm [thread:$0]  %s86_s1, 128, %s88_s23, [#allocation4]  }
  0xab   :  { %179 = dma.done.wait [#allocation4], 128  }
  0xac   :  { %180 = vsyncadd [#allocation4], 4294967168 }
  0xad   :  { %95 = vsyncpa [#allocation3], 1 }
  0xae   :  { %96 = vsyncpa [#allocation6], 1 }
  0xaf   :  { %97 = vsyncpa [#allocation4], 1 }

</bundles_post_ra>
